<compile_context>
chip_gen: v6e
topology: v6e:2x2x1
jax: 0.10.0
libtpu: 0.0.40
codegen_flags: <defaults>
</compile_context>

<pallas_src>
import functools

import jax
import jax.numpy as jnp
from jax.experimental import pallas as pl
from jax.experimental.pallas import tpu as pltpu


def _dice_partial_kernel(x_ref, t_ref, o_ref, *, hw, tile):
    """One (sample, spatial-tile) grid step -> per-class partial sums.

    x_ref/t_ref: (1, C, tile) blocks of logits / targets (any float dtype).
    o_ref:       (1, 1, 3, C, 1) partial [intersection, input_sum, target_sum].
    """
    x = x_ref[0].astype(jnp.float32)      # (C, tile)
    tgt = t_ref[0].astype(jnp.float32)    # (C, tile)
    sig = jax.nn.sigmoid(x)               # (C, tile)

    if hw % tile != 0:
        # Statically emitted only for ragged spatial sizes: zero out lanes past
        # the end of the image so the (possibly garbage) padded tail of the
        # final block contributes nothing to any sum.
        k = pl.program_id(1)
        valid = hw - k * tile                                   # scalar
        lane = jax.lax.broadcasted_iota(jnp.int32, sig.shape, 1)
        in_bounds = lane < valid
        sig = jnp.where(in_bounds, sig, 0.0)
        tgt = jnp.where(in_bounds, tgt, 0.0)

    o_ref[0, 0, 0] = jnp.sum(sig * tgt, axis=1, keepdims=True)  # (C, 1)
    o_ref[0, 0, 1] = jnp.sum(sig, axis=1, keepdims=True)
    o_ref[0, 0, 2] = jnp.sum(tgt, axis=1, keepdims=True)


def dice_loss(inputs, targets, weight, *, smooth=1.0, num_classes=11,
              tile=32768, input_dtype=jnp.bfloat16):
    """Pallas implementation of DiceLoss.forward for NCHW inputs/targets."""
    n, c, h, w = inputs.shape
    assert c == num_classes
    assert targets.shape == inputs.shape

    hw = h * w
    x3 = inputs.reshape(n, c, hw)    # free reshape, stays NCHW-contiguous
    t3 = targets.reshape(n, c, hw)

    # Halve HBM bytes of this bandwidth-bound kernel.  (Ideally the producer
    # already emits bf16 so this cast fuses upstream / is a no-op.)
    if input_dtype is not None:
        x3 = x3.astype(input_dtype)
        t3 = t3.astype(input_dtype)

    # Lane tile: multiple of 128, no larger than the (rounded-up) spatial size.
    tile = int(min(tile, pl.cdiv(hw, 128) * 128))
    num_k = int(pl.cdiv(hw, tile))
    grid = (n, num_k)

    # Per-(sample, tile) partials; both grid axes independent -> "parallel".
    sums = pl.pallas_call(
        functools.partial(_dice_partial_kernel, hw=hw, tile=tile),
        out_shape=jax.ShapeDtypeStruct((n, num_k, 3, c, 1), jnp.float32),
        grid_spec=pltpu.PrefetchScalarGridSpec(
            num_scalar_prefetch=0,
            grid=grid,
            in_specs=[
                pl.BlockSpec((1, c, tile), lambda i, k: (i, 0, k)),
                pl.BlockSpec((1, c, tile), lambda i, k: (i, 0, k)),
            ],
            out_specs=pl.BlockSpec((1, 1, 3, c, 1),
                                   lambda i, k: (i, k, 0, 0, 0)),
        ),
        compiler_params=pltpu.CompilerParams(
            dimension_semantics=("parallel", "parallel")),
    )(x3, t3)

    # Tiny O(C) epilogue in plain JAX (k-reduction + weights + dice + mean).
    per_class = jnp.sum(sums[..., 0], axis=(0, 1))          # (3, C)
    inter, isum, tsum = per_class[0], per_class[1], per_class[2]
    dice = (2.0 * inter + smooth) / (isum + tsum + smooth)
    return jnp.mean((1.0 - dice) * weight.astype(jnp.float32))


def dice_loss_ref(inputs, targets, weight, smooth=1.0, num_classes=11):
    """Pure-JAX reference mirroring the PyTorch forward (f32 math)."""
    s = jax.nn.sigmoid(inputs.astype(jnp.float32))
    t = targets.astype(jnp.float32)
    inter = jnp.sum(s * t, axis=(0, 2, 3))
    isum = jnp.sum(s, axis=(0, 2, 3))
    tsum = jnp.sum(t, axis=(0, 2, 3))
    dice = (2.0 * inter + smooth) / (isum + tsum + smooth)
    return jnp.mean((1.0 - dice) * weight)


if __name__ == "__main__":
    NUM_CLASSES = 11
    N, H, W = 2, 16, 16

    key = jax.random.PRNGKey(0)
    k1, k2 = jax.random.split(key)
    logits = jax.random.normal(k1, (N, NUM_CLASSES, H, W), dtype=jnp.float32)
    targets = (jax.random.uniform(k2, (N, NUM_CLASSES, H, W)) > 0.5).astype(jnp.float32)
    weight = jnp.ones((NUM_CLASSES,), dtype=jnp.float32)  # module default weight

    out = dice_loss(logits, targets, weight, smooth=1.0, num_classes=NUM_CLASSES)
    out = jax.block_until_ready(out)

    # Reference on the same bf16-rounded logits (the kernel feeds bf16 by
    # default) with f32 math -> tight tolerance.
    logits_bf = logits.astype(jnp.bfloat16).astype(jnp.float32)
    ref = dice_loss_ref(logits_bf, targets, weight, smooth=1.0, num_classes=NUM_CLASSES)
    assert jnp.allclose(out, ref, atol=1e-5, rtol=1e-5), (out, ref)

    # Cross-check against the pure-f32 reference (bf16 logits perturb the loss
    # by ~1e-3 relative at most).
    ref_f32 = dice_loss_ref(logits, targets, weight, smooth=1.0, num_classes=NUM_CLASSES)
    assert jnp.allclose(out, ref_f32, atol=5e-3, rtol=5e-3), (out, ref_f32)

    # Exercise the ragged-tail in-kernel mask path (hw=384 with tile=256 ->
    # last spatial block is half out-of-bounds and must be masked, not padded).
    H2, W2 = 24, 16
    k3, k4 = jax.random.split(k2)
    logits2 = jax.random.normal(k3, (N, NUM_CLASSES, H2, W2), dtype=jnp.float32)
    targets2 = (jax.random.uniform(k4, (N, NUM_CLASSES, H2, W2)) > 0.5).astype(jnp.float32)
    out2 = dice_loss(logits2, targets2, weight, smooth=1.0,
                     num_classes=NUM_CLASSES, tile=256)
    out2 = jax.block_until_ready(out2)
    ref2 = dice_loss_ref(logits2.astype(jnp.bfloat16).astype(jnp.float32),
                         targets2, weight, smooth=1.0, num_classes=NUM_CLASSES)
    assert jnp.allclose(out2, ref2, atol=1e-5, rtol=1e-5), (out2, ref2)

    print("KERNEL_OK")
</pallas_src>

<mosaic_0001>
module attributes {stable_mosaic.version = 11 : i64} {
  func.func @_dice_partial_kernel(%arg0: i32, %arg1: i32, %arg2: memref<1x11x256xbf16, #tpu.memory_space<vmem>>, %arg3: memref<1x11x256xbf16, #tpu.memory_space<vmem>>, %arg4: memref<1x1x3x11x1xf32, #tpu.memory_space<vmem>>) attributes {dimension_semantics = [#tpu.dimension_semantics<parallel>, #tpu.dimension_semantics<parallel>], iteration_bounds = array<i64: 2, 1>, scalar_prefetch = 0 : i64, scratch_operands = 0 : i64, tpu.core_type = #tpu.core_type<tc>, window_params = [{transform_indices = @transform_0, window_bounds = array<i64: 1, 11, 256>}, {transform_indices = @transform_1, window_bounds = array<i64: 1, 11, 256>}, {transform_indices = @transform_2, window_bounds = array<i64: 1, 1, 3, 11, 1>}]} {
    %c0 = arith.constant 0 : index
    %c0_0 = arith.constant 0 : index
    %c0_1 = arith.constant 0 : index
    %0 = vector.load %arg2[%c0, %c0_0, %c0_1] : memref<1x11x256xbf16, #tpu.memory_space<vmem>>, vector<1x11x256xbf16>
    %1 = vector.shape_cast %0 : vector<1x11x256xbf16> to vector<11x256xbf16>
    %2 = arith.extf %1 : vector<11x256xbf16> to vector<11x256xf32>
    %c0_2 = arith.constant 0 : index
    %c0_3 = arith.constant 0 : index
    %c0_4 = arith.constant 0 : index
    %3 = vector.load %arg3[%c0_2, %c0_3, %c0_4] : memref<1x11x256xbf16, #tpu.memory_space<vmem>>, vector<1x11x256xbf16>
    %4 = vector.shape_cast %3 : vector<1x11x256xbf16> to vector<11x256xbf16>
    %5 = arith.extf %4 : vector<11x256xbf16> to vector<11x256xf32>
    %6 = arith.negf %2 : vector<11x256xf32>
    %7 = math.exp %6 : vector<11x256xf32>
    %cst = arith.constant 1.000000e+00 : f32
    %8 = vector.broadcast %cst : f32 to vector<11x256xf32>
    %9 = arith.addf %8, %7 : vector<11x256xf32>
    %10 = arith.divf %8, %9 : vector<11x256xf32>
    %11 = arith.mulf %10, %5 : vector<11x256xf32>
    %cst_5 = arith.constant dense<0.000000e+00> : vector<11xf32>
    %12 = vector.multi_reduction <add>, %11, %cst_5 [1] : vector<11x256xf32> to vector<11xf32>
    %13 = vector.shape_cast %12 : vector<11xf32> to vector<11x1xf32>
    %c0_6 = arith.constant 0 : index
    %c0_7 = arith.constant 0 : index
    %c0_8 = arith.constant 0 : index
    %c0_9 = arith.constant 0 : index
    %c0_10 = arith.constant 0 : index
    %14 = vector.load %arg4[%c0_6, %c0_7, %c0_8, %c0_9, %c0_10] : memref<1x1x3x11x1xf32, #tpu.memory_space<vmem>>, vector<1x1x1x11x1xf32>
    %15 = vector.shape_cast %14 : vector<1x1x1x11x1xf32> to vector<11x1xf32>
    %16 = vector.shape_cast %13 : vector<11x1xf32> to vector<1x1x1x11x1xf32>
    tpu.vector_store %arg4[%c0_6, %c0_7, %c0_8, %c0_9, %c0_10], %16 {strides = array<i32>} : memref<1x1x3x11x1xf32, #tpu.memory_space<vmem>>, vector<1x1x1x11x1xf32>,
    %cst_11 = arith.constant dense<0.000000e+00> : vector<11xf32>
    %17 = vector.multi_reduction <add>, %10, %cst_11 [1] : vector<11x256xf32> to vector<11xf32>
    %18 = vector.shape_cast %17 : vector<11xf32> to vector<11x1xf32>
    %c0_12 = arith.constant 0 : index
    %c0_13 = arith.constant 0 : index
    %c1 = arith.constant 1 : index
    %c0_14 = arith.constant 0 : index
    %c0_15 = arith.constant 0 : index
    %19 = vector.load %arg4[%c0_12, %c0_13, %c1, %c0_14, %c0_15] : memref<1x1x3x11x1xf32, #tpu.memory_space<vmem>>, vector<1x1x1x11x1xf32>
    %20 = vector.shape_cast %19 : vector<1x1x1x11x1xf32> to vector<11x1xf32>
    %21 = vector.shape_cast %18 : vector<11x1xf32> to vector<1x1x1x11x1xf32>
    tpu.vector_store %arg4[%c0_12, %c0_13, %c1, %c0_14, %c0_15], %21 {strides = array<i32>} : memref<1x1x3x11x1xf32, #tpu.memory_space<vmem>>, vector<1x1x1x11x1xf32>,
    %cst_16 = arith.constant dense<0.000000e+00> : vector<11xf32>
    %22 = vector.multi_reduction <add>, %5, %cst_16 [1] : vector<11x256xf32> to vector<11xf32>
    %23 = vector.shape_cast %22 : vector<11xf32> to vector<11x1xf32>
    %c0_17 = arith.constant 0 : index
    %c0_18 = arith.constant 0 : index
    %c2 = arith.constant 2 : index
    %c0_19 = arith.constant 0 : index
    %c0_20 = arith.constant 0 : index
    %24 = vector.load %arg4[%c0_17, %c0_18, %c2, %c0_19, %c0_20] : memref<1x1x3x11x1xf32, #tpu.memory_space<vmem>>, vector<1x1x1x11x1xf32>
    %25 = vector.shape_cast %24 : vector<1x1x1x11x1xf32> to vector<11x1xf32>
    %26 = vector.shape_cast %23 : vector<11x1xf32> to vector<1x1x1x11x1xf32>
    tpu.vector_store %arg4[%c0_17, %c0_18, %c2, %c0_19, %c0_20], %26 {strides = array<i32>} : memref<1x1x3x11x1xf32, #tpu.memory_space<vmem>>, vector<1x1x1x11x1xf32>,
    return
  }
  func.func @transform_0(%arg0: i32, %arg1: i32) -> (i32, i32, i32) {
    %c0_i32 = arith.constant 0 : i32
    %c0_i32_0 = arith.constant 0 : i32
    return %arg0, %c0_i32, %arg1 : i32, i32, i32
  }
  func.func @transform_1(%arg0: i32, %arg1: i32) -> (i32, i32, i32) {
    %c0_i32 = arith.constant 0 : i32
    %c0_i32_0 = arith.constant 0 : i32
    return %arg0, %c0_i32, %arg1 : i32, i32, i32
  }
  func.func @transform_2(%arg0: i32, %arg1: i32) -> (i32, i32, i32, i32, i32) {
    %c0_i32 = arith.constant 0 : i32
    %c0_i32_0 = arith.constant 0 : i32
    %c0_i32_1 = arith.constant 0 : i32
    %c0_i32_2 = arith.constant 0 : i32
    return %arg0, %arg1, %c0_i32, %c0_i32_0, %c0_i32_1 : i32, i32, i32, i32, i32
  }
}

</mosaic_0001>

<bundles_post_ra>
// kernel: tpu_custom_call.1
= control target key start
LH: loop header
LB: loop body
LE: loop exit
PB: predicated region body
PF: predicated region fallthrough
CT: control target
= control target key end

     0   :  { %s502_s9 = smov 0   ;;  %s504_s10 = smov 0   ;;  %s548_s0 = inlined_call_operand.vmem [shape: bf16[2,11,256], index: 0, kind: input, shape index: {}]   ;;  %s549_s1 = inlined_call_operand.vmem [shape: bf16[2,11,256], index: 1, kind: input, shape index: {}]   ;;  %s550_s2 = inlined_call_operand.vmem [shape: f32[2,1,3,11,1], index: 2, kind: output, shape index: {}]  }
   0x1   :  { %s506_s11 = smov 0  }
   0x2 LB: > { %s24_s12 = sadd.s32 1, %s481_s10  ;;  %p404_p0 = scmp.ge.s32.totalorder %s485_s11, 1  ;;  %s485_s11 = sphi %s506_s11, %s12_s11   ;;  %s481_s10 = sphi %s504_s10, %s552_s10   ;;  %s477_s9 = sphi %s502_s9, %s551_s9  }
   0x3   : > { %p26_p1 = scmp.ge.s32.totalorder %s24_s12, 2  ;;  %p150_p2 = scmp.lt.s32.totalorder %s485_s11, 3 }
   0x5   : > { %s554_s12 = smov (%p26_p1, %s24_s12), 0  ;;  %p151_p3 = pnand %p404_p0, %p150_p2 }
   0x6   : > { %p190_p4 = scmp.lt.s32.totalorder (!%p151_p3), %s477_s9, 1 }
   0x7   : > { %154 = sbr.rel (%p151_p3) target bundleno = 202 (0xca), region = 28 }
   0xc   : > { %s556_s9 = smov (!%p190_p4, %s477_s9), 1  ;;  %vm261_vm0 = vcmask 1042432   ;;  %vm267_vm1 = vcmask 7168   ;;  %vm269_vm2 = vcmask 2048  }
   0xd   : > { %s420_s13 = sshll.u32 %s556_s9, 4  ;;  %s422_s20 = smul.u32 48, %s556_s9 }
   0xe   : > { %s197_s16 = scalar_lea.vmem %s548_s0, %s420_s13  ;;  %s207_s19 = scalar_lea.vmem %s549_s1, %s420_s13 }
   0xf   : > { %v218_v0 = vld [vmem:[%s197_s16] sm:$0xff]  ;;  %v219_v1 = vld [vmem:[%s197_s16 + $0x8] sm:$0x33]  ;;  %s217_s23 = scalar_lea.vmem %s550_s2, %s422_s20 }
  0x10   : > { %v220_v2 = vunpack.c.l.bf16 %v218_v0  ;;  %v221_v3 = vunpack.c.h.bf16 %v218_v0  ;;  %v222_v4 = vunpack.c.l.bf16 %v219_v1  ;;  %v223_v5 = vunpack.c.h.bf16 %v219_v1  ;;  %v224_v18 = vld [vmem:[%s207_s19] sm:$0xff]  ;;  %v225_v19 = vld [vmem:[%s207_s19 + $0x8] sm:$0x33] }
  0x11   : > { %v226_v20 = vunpack.c.l.bf16 %v224_v18  ;;  %v227_v21 = vunpack.c.h.bf16 %v224_v18  ;;  %v228_v22 = vunpack.c.l.bf16 %v225_v19  ;;  %v229_v24 = vunpack.c.h.bf16 %v225_v19 }
  0x12   : > { %v410_v6 = vmul.f32 -1.442695, %v220_v2  ;;  %v411_v7 = vmul.f32 -1.442695, %v221_v3  ;;  %v412_v8 = vmul.f32 -1.442695, %v222_v4 }
  0x13   : > { %v413_v9 = vmul.f32 -1.442695, %v223_v5  ;;  %v285_v38 = vsel %vm261_vm0, %v228_v22, 0.0  ;;  %v286_v39 = vsel %vm261_vm0, %v229_v24, 0.0  ;;  %v282_v43 = vadd.f32 %v227_v21, %v226_v20 }
  0x14   : > { %447 = vpow2.f32 %v410_v6  ;;  %v287_v42 = vadd.f32 %v286_v39, %v285_v38 }
  0x15   : > { %449 = vpow2.f32 %v411_v7 }
  0x16   : > { %451 = vpow2.f32 %v412_v8 }
  0x17   : > { %453 = vpow2.f32 %v413_v9 }
  0x21   : > { %v448_v10 = vpop.eup %447 }
  0x22   : > { %v450_v11 = vpop.eup %449  ;;  %v242_v12 = vadd.f32 1.0, %v448_v10 }
  0x23   : > { %v452_v13 = vpop.eup %451  ;;  %v243_v14 = vadd.f32 1.0, %v450_v11 }
  0x24   : > { %v454_v15 = vpop.eup %453  ;;  %455 = vrcp.f32 %v242_v12  ;;  %v244_v16 = vadd.f32 1.0, %v452_v13 }
  0x25   : > { %457 = vrcp.f32 %v243_v14  ;;  %v245_v17 = vadd.f32 1.0, %v454_v15 }
  0x26   : > { %459 = vrcp.f32 %v244_v16 }
  0x27   : > { %461 = vrcp.f32 %v245_v17 }
  0x31   : > { %v456_v23 = vpop.eup %455 }
  0x32   : > { %v458_v25 = vpop.eup %457  ;;  %v254_v26 = vmul.f32 %v456_v23, %v226_v20 }
  0x33   : > { %v460_v27 = vpop.eup %459  ;;  %v271_v28 = vadd.f32 %v458_v25, %v456_v23  ;;  %v255_v29 = vmul.f32 %v458_v25, %v227_v21 }
  0x34   : > { %v462_v30 = vpop.eup %461  ;;  %v274_v31 = vsel %vm261_vm0, %v460_v27, 0.0  ;;  %v256_v32 = vmul.f32 %v460_v27, %v228_v22 }
  0x35   : > { %272 = vadd.xlane.f32.xlu1 %v271_v28  ;;  %v258_v33 = vadd.f32 %v255_v29, %v254_v26  ;;  %v275_v34 = vsel %vm261_vm0, %v462_v30, 0.0  ;;  %v257_v35 = vmul.f32 %v462_v30, %v229_v24 }
  0x36   : > { %v276_v36 = vadd.f32 %v275_v34, %v274_v31  ;;  %v262_v37 = vsel %vm261_vm0, %v256_v32, 0.0 }
  0x37   : > { %259 = vadd.xlane.f32.xlu0 %v258_v33  ;;  %v263_v40 = vsel %vm261_vm0, %v257_v35, 0.0 }
  0x38   : > { %v264_v41 = vadd.f32 %v263_v40, %v262_v37 }
  0x39   : > { %277 = vadd.xlane.f32.xlu1 %v276_v36 }
  0x3b   : > { %265 = vadd.xlane.f32.xlu0 %v264_v41 }
  0x3d   : > { %288 = vadd.xlane.f32.xlu1 %v287_v42 }
  0x3f   : > { %283 = vadd.xlane.f32.xlu0 %v282_v43 }
  0xbe   : > { %v273_v44 = vpop.xlane.xlu1 %272 }
  0xbf   : > { %414 = vst.msk [vmem:[%s217_s23 + $0x10] sm:$0xff] %vm267_vm1, %v273_v44 }
  0xc0   : > { %v260_v45 = vpop.xlane.xlu0 %259 }
  0xc1   : > { %268 = vst.msk [vmem:[%s217_s23] sm:$0xff] %vm267_vm1, %v260_v45 }
  0xc2   : > { %v278_v46 = vpop.xlane.xlu1 %277 }
  0xc3   : > { %415 = vst.msk [vmem:[%s217_s23 + $0x18] sm:$0x7] %vm269_vm2, %v278_v46 }
  0xc4   : > { %v266_v47 = vpop.xlane.xlu0 %265 }
  0xc5   : > { %270 = vst.msk [vmem:[%s217_s23 + $0x8] sm:$0x7] %vm269_vm2, %v266_v47 }
  0xc6   : > { %v289_v48 = vpop.xlane.xlu1 %288 }
  0xc7   : > { %417 = vst.msk [vmem:[%s217_s23 + $0x28] sm:$0x7] %vm269_vm2, %v289_v48 }
  0xc8   : > { %v284_v49 = vpop.xlane.xlu0 %283 }
  0xc9   : > { %416 = vst.msk [vmem:[%s217_s23 + $0x20] sm:$0xff] %vm267_vm1, %v284_v49 }
  0xca PF: > { %s12_s11 = sadd.s32 1, %s485_s11   ;;  %s551_s9 = smov %s481_s10 }
  0xcb   : > { %p9_p5 = scmp.ge.s32.totalorder %s12_s11, 4   ;;  %s552_s10 = smov %s554_s12 }
  0xcd   :  { %11 = sbr.rel (!%p9_p5) target bundleno = 2 (0x2), region = 63 }

</bundles_post_ra>
